<compile_context>
chip_gen: v7x
topology: tpu7x:2x2x1
jax: 0.10.0
libtpu: 0.0.40
codegen_flags: <defaults>
</compile_context>

<pallas_src>
import functools

import jax
import jax.numpy as jnp
import numpy as np
from jax.experimental import pallas as pl
from jax.experimental.pallas import tpu as pltpu

_INV_SQRT2 = 0.7071067811865476


def _gelu_exact(x):
    # PyTorch nn.GELU() default = exact erf-based GELU.
    return 0.5 * x * (1.0 + jax.lax.erf(x * _INV_SQRT2))


def _round_up(v, m):
    return (v + m - 1) // m * m


def _res_bottleneck_kernel(x_ref, w1_ref, b1_ref, w2_ref, b2_ref, w3_ref,
                           b3_ref, mask_ref, o_ref, *, W, HWp, block_b):
    """One grid step: `block_b` images, each a channels-first (ch, HWp) slab."""
    # Grid-resident parameters (constant index_maps): load once per step and
    # hoist out of the per-image loop.
    w1 = w1_ref[...]                     # (Cp, N)
    b1 = b1_ref[...]                     # (Cp, 1)
    b2 = b2_ref[...]                     # (Cp, 1)
    w3 = w3_ref[...]                     # (N, Cp)
    b3 = b3_ref[...]                     # (N, 1)
    w2 = [w2_ref[t] for t in range(9)]   # nine (Cp, Cp) tap matrices

    shifts, masks = [0] * 9, [None] * 9
    for kh in range(3):
        for kw in range(3):
            t = kh * 3 + kw
            d = (kh - 1) * W + (kw - 1)
            shifts[t] = (-d) % HWp
            if d != 0:
                masks[t] = mask_ref[t][None, :]          # (1, HWp) validity mask

    def one_image(bi):
        x2d = x_ref[bi]                                  # (N, HWp), HWp in lanes

        # conv1x1 (N -> Cp) + exact GELU: one channel matmul over the full slab.
        h1 = jnp.dot(w1, x2d, preferred_element_type=jnp.float32) + b1
        h1 = _gelu_exact(h1)                             # (Cp, HWp)

        # conv3x3, padding=1: nine lane-rolled, border-masked taps, each a
        # (Cp,Cp)x(Cp,HWp) matmul accumulated in f32 (no 9*Cp stacked temp).
        acc = jnp.dot(w2[4], h1, preferred_element_type=jnp.float32)   # center
        for t in range(9):
            if t == 4:
                continue
            tap = pltpu.roll(h1, shift=shifts[t], axis=1) * masks[t]
            acc = acc + jnp.dot(w2[t], tap, preferred_element_type=jnp.float32)
        h2 = _gelu_exact(acc + b2)                       # (Cp, HWp)

        # conv1x1 (Cp -> N) + residual; lane-dense unmasked store.
        out = jnp.dot(w3, h2, preferred_element_type=jnp.float32) + b3
        o_ref[bi] = (x2d + out).astype(o_ref.dtype)

    if block_b == 1:
        one_image(0)
    else:
        # fori_loop (not Python unrolling) bounds per-image live ranges.
        def body(bi, carry):
            one_image(bi)
            return carry
        jax.lax.fori_loop(0, block_b, body, 0)


def residual_bottleneck(x_nchw, params, *, block_b=None):
    """x_nchw: (B, N, H, W) float32; params are PyTorch-shaped conv weights."""
    w1, b1, w2, b2, w3, b3 = params
    B, N, H, W = x_nchw.shape
    C = N // 2
    Cp = max(8, _round_up(C, 8))       # hidden channels padded to a sublane tile
    HW = H * W
    HWp = _round_up(HW, 128)           # lane-dense spatial axis

    # block_b images per grid step: keep >= 2 grid steps when B >= 2 so both
    # v7x TensorCores get work, and target ~2 MiB of input per step.
    if block_b is None:
        per_img_bytes = N * HWp * 4
        block_b = max(1, (2 * 2 ** 20) // per_img_bytes)
        block_b = min(block_b, max(1, B // 2))
        while B % block_b:
            block_b -= 1
    assert B % block_b == 0

    # NCHW kept end-to-end; only free reshapes (channels -> sublanes,
    # H*W -> lanes) plus zero-padding of the lane axis to a multiple of 128.
    # Padded lanes only produce padded-lane outputs (masked taps), sliced off.
    x_flat = x_nchw.reshape(B, N, HW)
    if HWp != HW:
        x_flat = jnp.pad(x_flat, ((0, 0), (0, 0), (0, HWp - HW)))

    # PyTorch OIHW conv weights -> channels-first matmuls (zero-padded C -> Cp;
    # padded rows/cols are exactly zero so results are unchanged).
    cpad = Cp - C
    w1_m = jnp.pad(w1[:, :, 0, 0], ((0, cpad), (0, 0)))               # (Cp, N)
    b1_m = jnp.pad(b1.reshape(C, 1), ((0, cpad), (0, 0)))             # (Cp, 1)
    w2_t = jnp.transpose(w2, (2, 3, 0, 1)).reshape(9, C, C)           # [tap, co, ci]
    w2_m = jnp.pad(w2_t, ((0, 0), (0, cpad), (0, cpad)))              # (9, Cp, Cp)
    b2_m = jnp.pad(b2.reshape(C, 1), ((0, cpad), (0, 0)))             # (Cp, 1)
    w3_m = jnp.pad(w3[:, :, 0, 0], ((0, 0), (0, cpad)))               # (N, Cp)
    b3_m = b3.reshape(N, 1)                                           # (N, 1)

    # Precomputed 0/1 validity masks for the 9 conv3x3 taps (padded lanes = 0).
    p = np.arange(HW)
    row, col = p // W, p % W
    masks = np.zeros((9, HWp), np.float32)
    for kh in range(3):
        for kw in range(3):
            dh, dw = kh - 1, kw - 1
            valid = ((row + dh >= 0) & (row + dh < H) &
                     (col + dw >= 0) & (col + dw < W))
            masks[kh * 3 + kw, :HW] = valid.astype(np.float32)
    masks = jnp.asarray(masks)

    # Explicit VMEM budget: double-buffered I/O blocks + resident weights/masks
    # + per-image live temps (the fori_loop bounds them to one image at a time).
    # Capped at 48 MiB for headroom under v7x's 64 MiB physical VMEM (v5e/v6e
    # have 128 MiB; raise the cap there if block_b is also grown).
    # TODO(synk): for very large H*W, tile the spatial axis with a 1-row halo
    # (second "parallel" grid axis) instead of relying on a bigger VMEM cap.
    io_block = block_b * N * HWp
    weights = Cp * N + 9 * Cp * Cp + N * Cp + 2 * Cp + N + 9 * HWp
    act_live = (3 * N + 6 * Cp) * HWp
    est_bytes = 4 * (2 * 2 * io_block + 2 * weights + act_live)
    vmem_limit = int(min(48 * 2 ** 20, max(32 * 2 ** 20, 2 * est_bytes)))

    kernel = functools.partial(_res_bottleneck_kernel, W=W, HWp=HWp,
                               block_b=block_b)

    out_flat = pl.pallas_call(
        kernel,
        out_shape=jax.ShapeDtypeStruct((B, N, HWp), x_flat.dtype),
        grid_spec=pltpu.PrefetchScalarGridSpec(
            num_scalar_prefetch=0,
            grid=(B // block_b,),
            in_specs=[
                pl.BlockSpec((block_b, N, HWp), lambda b: (b, 0, 0)),
                pl.BlockSpec((Cp, N), lambda b: (0, 0)),
                pl.BlockSpec((Cp, 1), lambda b: (0, 0)),
                pl.BlockSpec((9, Cp, Cp), lambda b: (0, 0, 0)),
                pl.BlockSpec((Cp, 1), lambda b: (0, 0)),
                pl.BlockSpec((N, Cp), lambda b: (0, 0)),
                pl.BlockSpec((N, 1), lambda b: (0, 0)),
                pl.BlockSpec((9, HWp), lambda b: (0, 0)),
            ],
            out_specs=pl.BlockSpec((block_b, N, HWp), lambda b: (b, 0, 0)),
        ),
        compiler_params=pltpu.CompilerParams(
            dimension_semantics=("parallel",),
            vmem_limit_bytes=vmem_limit,
        ),
    )(x_flat, w1_m, b1_m, w2_m, b2_m, w3_m, b3_m, masks)

    return out_flat[:, :, :HW].reshape(B, N, H, W)


def reference_forward(x_nchw, params):
    """Pure-JAX/XLA reference matching the PyTorch module exactly."""
    w1, b1, w2, b2, w3, b3 = params

    def conv(x, w, b, pad):
        y = jax.lax.conv_general_dilated(
            x, w, window_strides=(1, 1), padding=[(pad, pad), (pad, pad)],
            dimension_numbers=('NCHW', 'OIHW', 'NCHW'))
        return y + b[None, :, None, None]

    h = jax.nn.gelu(conv(x_nchw, w1, b1, 0), approximate=False)
    h = jax.nn.gelu(conv(h, w2, b2, 1), approximate=False)
    h = conv(h, w3, b3, 0)
    return x_nchw + h


if __name__ == "__main__":
    B, N, H, W = 2, 8, 16, 16       # small demo shapes; module implies even N
    C = N // 2

    key = jax.random.PRNGKey(0)
    ks = jax.random.split(key, 7)
    # conv1x1(N, N//2), conv3x3(N//2, N//2), conv1x1(N//2, N)  (PyTorch OIHW + bias)
    w1 = jax.random.normal(ks[0], (C, N, 1, 1), jnp.float32) * 0.1
    b1 = jax.random.normal(ks[1], (C,), jnp.float32) * 0.1
    w2 = jax.random.normal(ks[2], (C, C, 3, 3), jnp.float32) * 0.1
    b2 = jax.random.normal(ks[3], (C,), jnp.float32) * 0.1
    w3 = jax.random.normal(ks[4], (N, C, 1, 1), jnp.float32) * 0.1
    b3 = jax.random.normal(ks[5], (N,), jnp.float32) * 0.1
    params = (w1, b1, w2, b2, w3, b3)

    x = jax.random.normal(ks[6], (B, N, H, W), jnp.float32)

    out = jax.block_until_ready(residual_bottleneck(x, params))
    ref = jax.block_until_ready(reference_forward(x, params))

    np.testing.assert_allclose(np.asarray(out), np.asarray(ref), rtol=1e-4, atol=1e-4)
    print("KERNEL_OK")
</pallas_src>

<mosaic_0001>
module attributes {stable_mosaic.version = 11 : i64} {
  func.func @_res_bottleneck_kernel(%arg0: i32, %arg1: memref<1x8x256xf32, #tpu.memory_space<vmem>>, %arg2: memref<8x8xf32, #tpu.memory_space<vmem>>, %arg3: memref<8x1xf32, #tpu.memory_space<vmem>>, %arg4: memref<9x8x8xf32, #tpu.memory_space<vmem>>, %arg5: memref<8x1xf32, #tpu.memory_space<vmem>>, %arg6: memref<8x8xf32, #tpu.memory_space<vmem>>, %arg7: memref<8x1xf32, #tpu.memory_space<vmem>>, %arg8: memref<9x256xf32, #tpu.memory_space<vmem>>, %arg9: memref<1x8x256xf32, #tpu.memory_space<vmem>>) attributes {dimension_semantics = [#tpu.dimension_semantics<parallel>], iteration_bounds = array<i64: 2>, scalar_prefetch = 0 : i64, scratch_operands = 0 : i64, tpu.core_type = #tpu.core_type<tc>, window_params = [{transform_indices = @transform_0, window_bounds = array<i64: 1, 8, 256>}, {pipeline_mode = #tpu.pipeline_mode<synchronous>, transform_indices = @transform_1, window_bounds = array<i64: 8, 8>}, {pipeline_mode = #tpu.pipeline_mode<synchronous>, transform_indices = @transform_2, window_bounds = array<i64: 8, 1>}, {pipeline_mode = #tpu.pipeline_mode<synchronous>, transform_indices = @transform_3, window_bounds = array<i64: 9, 8, 8>}, {pipeline_mode = #tpu.pipeline_mode<synchronous>, transform_indices = @transform_4, window_bounds = array<i64: 8, 1>}, {pipeline_mode = #tpu.pipeline_mode<synchronous>, transform_indices = @transform_5, window_bounds = array<i64: 8, 8>}, {pipeline_mode = #tpu.pipeline_mode<synchronous>, transform_indices = @transform_6, window_bounds = array<i64: 8, 1>}, {pipeline_mode = #tpu.pipeline_mode<synchronous>, transform_indices = @transform_7, window_bounds = array<i64: 9, 256>}, {transform_indices = @transform_8, window_bounds = array<i64: 1, 8, 256>}]} {
    %c0 = arith.constant 0 : index
    %c0_0 = arith.constant 0 : index
    %0 = vector.load %arg2[%c0, %c0_0] : memref<8x8xf32, #tpu.memory_space<vmem>>, vector<8x8xf32>
    %c0_1 = arith.constant 0 : index
    %c0_2 = arith.constant 0 : index
    %1 = vector.load %arg3[%c0_1, %c0_2] : memref<8x1xf32, #tpu.memory_space<vmem>>, vector<8x1xf32>
    %c0_3 = arith.constant 0 : index
    %c0_4 = arith.constant 0 : index
    %2 = vector.load %arg5[%c0_3, %c0_4] : memref<8x1xf32, #tpu.memory_space<vmem>>, vector<8x1xf32>
    %c0_5 = arith.constant 0 : index
    %c0_6 = arith.constant 0 : index
    %3 = vector.load %arg6[%c0_5, %c0_6] : memref<8x8xf32, #tpu.memory_space<vmem>>, vector<8x8xf32>
    %c0_7 = arith.constant 0 : index
    %c0_8 = arith.constant 0 : index
    %4 = vector.load %arg7[%c0_7, %c0_8] : memref<8x1xf32, #tpu.memory_space<vmem>>, vector<8x1xf32>
    %c0_9 = arith.constant 0 : index
    %c0_10 = arith.constant 0 : index
    %c0_11 = arith.constant 0 : index
    %5 = vector.load %arg4[%c0_9, %c0_10, %c0_11] : memref<9x8x8xf32, #tpu.memory_space<vmem>>, vector<1x8x8xf32>
    %6 = vector.shape_cast %5 : vector<1x8x8xf32> to vector<8x8xf32>
    %c1 = arith.constant 1 : index
    %c0_12 = arith.constant 0 : index
    %c0_13 = arith.constant 0 : index
    %7 = vector.load %arg4[%c1, %c0_12, %c0_13] : memref<9x8x8xf32, #tpu.memory_space<vmem>>, vector<1x8x8xf32>
    %8 = vector.shape_cast %7 : vector<1x8x8xf32> to vector<8x8xf32>
    %c2 = arith.constant 2 : index
    %c0_14 = arith.constant 0 : index
    %c0_15 = arith.constant 0 : index
    %9 = vector.load %arg4[%c2, %c0_14, %c0_15] : memref<9x8x8xf32, #tpu.memory_space<vmem>>, vector<1x8x8xf32>
    %10 = vector.shape_cast %9 : vector<1x8x8xf32> to vector<8x8xf32>
    %c3 = arith.constant 3 : index
    %c0_16 = arith.constant 0 : index
    %c0_17 = arith.constant 0 : index
    %11 = vector.load %arg4[%c3, %c0_16, %c0_17] : memref<9x8x8xf32, #tpu.memory_space<vmem>>, vector<1x8x8xf32>
    %12 = vector.shape_cast %11 : vector<1x8x8xf32> to vector<8x8xf32>
    %c4 = arith.constant 4 : index
    %c0_18 = arith.constant 0 : index
    %c0_19 = arith.constant 0 : index
    %13 = vector.load %arg4[%c4, %c0_18, %c0_19] : memref<9x8x8xf32, #tpu.memory_space<vmem>>, vector<1x8x8xf32>
    %14 = vector.shape_cast %13 : vector<1x8x8xf32> to vector<8x8xf32>
    %c5 = arith.constant 5 : index
    %c0_20 = arith.constant 0 : index
    %c0_21 = arith.constant 0 : index
    %15 = vector.load %arg4[%c5, %c0_20, %c0_21] : memref<9x8x8xf32, #tpu.memory_space<vmem>>, vector<1x8x8xf32>
    %16 = vector.shape_cast %15 : vector<1x8x8xf32> to vector<8x8xf32>
    %c6 = arith.constant 6 : index
    %c0_22 = arith.constant 0 : index
    %c0_23 = arith.constant 0 : index
    %17 = vector.load %arg4[%c6, %c0_22, %c0_23] : memref<9x8x8xf32, #tpu.memory_space<vmem>>, vector<1x8x8xf32>
    %18 = vector.shape_cast %17 : vector<1x8x8xf32> to vector<8x8xf32>
    %c7 = arith.constant 7 : index
    %c0_24 = arith.constant 0 : index
    %c0_25 = arith.constant 0 : index
    %19 = vector.load %arg4[%c7, %c0_24, %c0_25] : memref<9x8x8xf32, #tpu.memory_space<vmem>>, vector<1x8x8xf32>
    %20 = vector.shape_cast %19 : vector<1x8x8xf32> to vector<8x8xf32>
    %c8 = arith.constant 8 : index
    %c0_26 = arith.constant 0 : index
    %c0_27 = arith.constant 0 : index
    %21 = vector.load %arg4[%c8, %c0_26, %c0_27] : memref<9x8x8xf32, #tpu.memory_space<vmem>>, vector<1x8x8xf32>
    %22 = vector.shape_cast %21 : vector<1x8x8xf32> to vector<8x8xf32>
    %c0_28 = arith.constant 0 : index
    %c0_29 = arith.constant 0 : index
    %23 = vector.load %arg8[%c0_28, %c0_29] : memref<9x256xf32, #tpu.memory_space<vmem>>, vector<1x256xf32>
    %24 = vector.shape_cast %23 : vector<1x256xf32> to vector<256xf32>
    %25 = vector.shape_cast %24 : vector<256xf32> to vector<1x256xf32>
    %c1_30 = arith.constant 1 : index
    %c0_31 = arith.constant 0 : index
    %26 = vector.load %arg8[%c1_30, %c0_31] : memref<9x256xf32, #tpu.memory_space<vmem>>, vector<1x256xf32>
    %27 = vector.shape_cast %26 : vector<1x256xf32> to vector<256xf32>
    %28 = vector.shape_cast %27 : vector<256xf32> to vector<1x256xf32>
    %c2_32 = arith.constant 2 : index
    %c0_33 = arith.constant 0 : index
    %29 = vector.load %arg8[%c2_32, %c0_33] : memref<9x256xf32, #tpu.memory_space<vmem>>, vector<1x256xf32>
    %30 = vector.shape_cast %29 : vector<1x256xf32> to vector<256xf32>
    %31 = vector.shape_cast %30 : vector<256xf32> to vector<1x256xf32>
    %c3_34 = arith.constant 3 : index
    %c0_35 = arith.constant 0 : index
    %32 = vector.load %arg8[%c3_34, %c0_35] : memref<9x256xf32, #tpu.memory_space<vmem>>, vector<1x256xf32>
    %33 = vector.shape_cast %32 : vector<1x256xf32> to vector<256xf32>
    %34 = vector.shape_cast %33 : vector<256xf32> to vector<1x256xf32>
    %c5_36 = arith.constant 5 : index
    %c0_37 = arith.constant 0 : index
    %35 = vector.load %arg8[%c5_36, %c0_37] : memref<9x256xf32, #tpu.memory_space<vmem>>, vector<1x256xf32>
    %36 = vector.shape_cast %35 : vector<1x256xf32> to vector<256xf32>
    %37 = vector.shape_cast %36 : vector<256xf32> to vector<1x256xf32>
    %c6_38 = arith.constant 6 : index
    %c0_39 = arith.constant 0 : index
    %38 = vector.load %arg8[%c6_38, %c0_39] : memref<9x256xf32, #tpu.memory_space<vmem>>, vector<1x256xf32>
    %39 = vector.shape_cast %38 : vector<1x256xf32> to vector<256xf32>
    %40 = vector.shape_cast %39 : vector<256xf32> to vector<1x256xf32>
    %c7_40 = arith.constant 7 : index
    %c0_41 = arith.constant 0 : index
    %41 = vector.load %arg8[%c7_40, %c0_41] : memref<9x256xf32, #tpu.memory_space<vmem>>, vector<1x256xf32>
    %42 = vector.shape_cast %41 : vector<1x256xf32> to vector<256xf32>
    %43 = vector.shape_cast %42 : vector<256xf32> to vector<1x256xf32>
    %c8_42 = arith.constant 8 : index
    %c0_43 = arith.constant 0 : index
    %44 = vector.load %arg8[%c8_42, %c0_43] : memref<9x256xf32, #tpu.memory_space<vmem>>, vector<1x256xf32>
    %45 = vector.shape_cast %44 : vector<1x256xf32> to vector<256xf32>
    %46 = vector.shape_cast %45 : vector<256xf32> to vector<1x256xf32>
    %c0_44 = arith.constant 0 : index
    %c0_45 = arith.constant 0 : index
    %c0_46 = arith.constant 0 : index
    %47 = vector.load %arg1[%c0_44, %c0_45, %c0_46] : memref<1x8x256xf32, #tpu.memory_space<vmem>>, vector<1x8x256xf32>
    %48 = vector.shape_cast %47 : vector<1x8x256xf32> to vector<8x256xf32>
    %cst = arith.constant dense<0.000000e+00> : vector<8x256xf32>
    %49 = tpu.matmul %0, %48, %cst {dimension_numbers = #tpu.dot_dimension_numbers<[1], [0], [0], [1], [0, 0, 1, 1], [], []>} : vector<8x8xf32>, vector<8x256xf32>, vector<8x256xf32> -> vector<8x256xf32>
    %50 = vector.broadcast %1 : vector<8x1xf32> to vector<8x256xf32>
    %51 = arith.addf %49, %50 : vector<8x256xf32>
    %cst_47 = arith.constant 5.000000e-01 : f32
    %52 = vector.broadcast %cst_47 : f32 to vector<8x256xf32>
    %53 = arith.mulf %52, %51 : vector<8x256xf32>
    %cst_48 = arith.constant 0.707106769 : f32
    %54 = vector.broadcast %cst_48 : f32 to vector<8x256xf32>
    %55 = arith.mulf %51, %54 : vector<8x256xf32>
    %56 = math.erf %55 : vector<8x256xf32>
    %cst_49 = arith.constant 1.000000e+00 : f32
    %57 = vector.broadcast %cst_49 : f32 to vector<8x256xf32>
    %58 = arith.addf %57, %56 : vector<8x256xf32>
    %59 = arith.mulf %53, %58 : vector<8x256xf32>
    %cst_50 = arith.constant dense<0.000000e+00> : vector<8x256xf32>
    %60 = tpu.matmul %14, %59, %cst_50 {dimension_numbers = #tpu.dot_dimension_numbers<[1], [0], [0], [1], [0, 0, 1, 1], [], []>} : vector<8x8xf32>, vector<8x256xf32>, vector<8x256xf32> -> vector<8x256xf32>
    %c17_i32 = arith.constant 17 : i32
    %61 = tpu.dynamic_rotate %59 by %c17_i32 dim 1 : vector<8x256xf32>, i32 -> vector<8x256xf32>
    %62 = vector.broadcast %25 : vector<1x256xf32> to vector<8x256xf32>
    %63 = arith.mulf %61, %62 : vector<8x256xf32>
    %cst_51 = arith.constant dense<0.000000e+00> : vector<8x256xf32>
    %64 = tpu.matmul %6, %63, %cst_51 {dimension_numbers = #tpu.dot_dimension_numbers<[1], [0], [0], [1], [0, 0, 1, 1], [], []>} : vector<8x8xf32>, vector<8x256xf32>, vector<8x256xf32> -> vector<8x256xf32>
    %65 = arith.addf %60, %64 : vector<8x256xf32>
    %c16_i32 = arith.constant 16 : i32
    %66 = tpu.dynamic_rotate %59 by %c16_i32 dim 1 : vector<8x256xf32>, i32 -> vector<8x256xf32>
    %67 = vector.broadcast %28 : vector<1x256xf32> to vector<8x256xf32>
    %68 = arith.mulf %66, %67 : vector<8x256xf32>
    %cst_52 = arith.constant dense<0.000000e+00> : vector<8x256xf32>
    %69 = tpu.matmul %8, %68, %cst_52 {dimension_numbers = #tpu.dot_dimension_numbers<[1], [0], [0], [1], [0, 0, 1, 1], [], []>} : vector<8x8xf32>, vector<8x256xf32>, vector<8x256xf32> -> vector<8x256xf32>
    %70 = arith.addf %65, %69 : vector<8x256xf32>
    %c15_i32 = arith.constant 15 : i32
    %71 = tpu.dynamic_rotate %59 by %c15_i32 dim 1 : vector<8x256xf32>, i32 -> vector<8x256xf32>
    %72 = vector.broadcast %31 : vector<1x256xf32> to vector<8x256xf32>
    %73 = arith.mulf %71, %72 : vector<8x256xf32>
    %cst_53 = arith.constant dense<0.000000e+00> : vector<8x256xf32>
    %74 = tpu.matmul %10, %73, %cst_53 {dimension_numbers = #tpu.dot_dimension_numbers<[1], [0], [0], [1], [0, 0, 1, 1], [], []>} : vector<8x8xf32>, vector<8x256xf32>, vector<8x256xf32> -> vector<8x256xf32>
    %75 = arith.addf %70, %74 : vector<8x256xf32>
    %c1_i32 = arith.constant 1 : i32
    %76 = tpu.dynamic_rotate %59 by %c1_i32 dim 1 : vector<8x256xf32>, i32 -> vector<8x256xf32>
    %77 = vector.broadcast %34 : vector<1x256xf32> to vector<8x256xf32>
    %78 = arith.mulf %76, %77 : vector<8x256xf32>
    %cst_54 = arith.constant dense<0.000000e+00> : vector<8x256xf32>
    %79 = tpu.matmul %12, %78, %cst_54 {dimension_numbers = #tpu.dot_dimension_numbers<[1], [0], [0], [1], [0, 0, 1, 1], [], []>} : vector<8x8xf32>, vector<8x256xf32>, vector<8x256xf32> -> vector<8x256xf32>
    %80 = arith.addf %75, %79 : vector<8x256xf32>
    %c255_i32 = arith.constant 255 : i32
    %81 = tpu.dynamic_rotate %59 by %c255_i32 dim 1 : vector<8x256xf32>, i32 -> vector<8x256xf32>
    %82 = vector.broadcast %37 : vector<1x256xf32> to vector<8x256xf32>
    %83 = arith.mulf %81, %82 : vector<8x256xf32>
    %cst_55 = arith.constant dense<0.000000e+00> : vector<8x256xf32>
    %84 = tpu.matmul %16, %83, %cst_55 {dimension_numbers = #tpu.dot_dimension_numbers<[1], [0], [0], [1], [0, 0, 1, 1], [], []>} : vector<8x8xf32>, vector<8x256xf32>, vector<8x256xf32> -> vector<8x256xf32>
    %85 = arith.addf %80, %84 : vector<8x256xf32>
    %c241_i32 = arith.constant 241 : i32
    %86 = tpu.dynamic_rotate %59 by %c241_i32 dim 1 : vector<8x256xf32>, i32 -> vector<8x256xf32>
    %87 = vector.broadcast %40 : vector<1x256xf32> to vector<8x256xf32>
    %88 = arith.mulf %86, %87 : vector<8x256xf32>
    %cst_56 = arith.constant dense<0.000000e+00> : vector<8x256xf32>
    %89 = tpu.matmul %18, %88, %cst_56 {dimension_numbers = #tpu.dot_dimension_numbers<[1], [0], [0], [1], [0, 0, 1, 1], [], []>} : vector<8x8xf32>, vector<8x256xf32>, vector<8x256xf32> -> vector<8x256xf32>
    %90 = arith.addf %85, %89 : vector<8x256xf32>
    %c240_i32 = arith.constant 240 : i32
    %91 = tpu.dynamic_rotate %59 by %c240_i32 dim 1 : vector<8x256xf32>, i32 -> vector<8x256xf32>
    %92 = vector.broadcast %43 : vector<1x256xf32> to vector<8x256xf32>
    %93 = arith.mulf %91, %92 : vector<8x256xf32>
    %cst_57 = arith.constant dense<0.000000e+00> : vector<8x256xf32>
    %94 = tpu.matmul %20, %93, %cst_57 {dimension_numbers = #tpu.dot_dimension_numbers<[1], [0], [0], [1], [0, 0, 1, 1], [], []>} : vector<8x8xf32>, vector<8x256xf32>, vector<8x256xf32> -> vector<8x256xf32>
    %95 = arith.addf %90, %94 : vector<8x256xf32>
    %c239_i32 = arith.constant 239 : i32
    %96 = tpu.dynamic_rotate %59 by %c239_i32 dim 1 : vector<8x256xf32>, i32 -> vector<8x256xf32>
    %97 = vector.broadcast %46 : vector<1x256xf32> to vector<8x256xf32>
    %98 = arith.mulf %96, %97 : vector<8x256xf32>
    %cst_58 = arith.constant dense<0.000000e+00> : vector<8x256xf32>
    %99 = tpu.matmul %22, %98, %cst_58 {dimension_numbers = #tpu.dot_dimension_numbers<[1], [0], [0], [1], [0, 0, 1, 1], [], []>} : vector<8x8xf32>, vector<8x256xf32>, vector<8x256xf32> -> vector<8x256xf32>
    %100 = arith.addf %95, %99 : vector<8x256xf32>
    %101 = vector.broadcast %2 : vector<8x1xf32> to vector<8x256xf32>
    %102 = arith.addf %100, %101 : vector<8x256xf32>
    %cst_59 = arith.constant 5.000000e-01 : f32
    %103 = vector.broadcast %cst_59 : f32 to vector<8x256xf32>
    %104 = arith.mulf %103, %102 : vector<8x256xf32>
    %cst_60 = arith.constant 0.707106769 : f32
    %105 = vector.broadcast %cst_60 : f32 to vector<8x256xf32>
    %106 = arith.mulf %102, %105 : vector<8x256xf32>
    %107 = math.erf %106 : vector<8x256xf32>
    %cst_61 = arith.constant 1.000000e+00 : f32
    %108 = vector.broadcast %cst_61 : f32 to vector<8x256xf32>
    %109 = arith.addf %108, %107 : vector<8x256xf32>
    %110 = arith.mulf %104, %109 : vector<8x256xf32>
    %cst_62 = arith.constant dense<0.000000e+00> : vector<8x256xf32>
    %111 = tpu.matmul %3, %110, %cst_62 {dimension_numbers = #tpu.dot_dimension_numbers<[1], [0], [0], [1], [0, 0, 1, 1], [], []>} : vector<8x8xf32>, vector<8x256xf32>, vector<8x256xf32> -> vector<8x256xf32>
    %112 = vector.broadcast %4 : vector<8x1xf32> to vector<8x256xf32>
    %113 = arith.addf %111, %112 : vector<8x256xf32>
    %114 = arith.addf %48, %113 : vector<8x256xf32>
    %c0_63 = arith.constant 0 : index
    %c0_64 = arith.constant 0 : index
    %c0_65 = arith.constant 0 : index
    %115 = vector.load %arg9[%c0_63, %c0_64, %c0_65] : memref<1x8x256xf32, #tpu.memory_space<vmem>>, vector<1x8x256xf32>
    %116 = vector.shape_cast %115 : vector<1x8x256xf32> to vector<8x256xf32>
    %117 = vector.shape_cast %114 : vector<8x256xf32> to vector<1x8x256xf32>
    tpu.vector_store %arg9[%c0_63, %c0_64, %c0_65], %117 {strides = array<i32>} : memref<1x8x256xf32, #tpu.memory_space<vmem>>, vector<1x8x256xf32>,
    return
  }
  func.func @transform_0(%arg0: i32) -> (i32, i32, i32) {
    %c0_i32 = arith.constant 0 : i32
    %c0_i32_0 = arith.constant 0 : i32
    %c0_i32_1 = arith.constant 0 : i32
    return %arg0, %c0_i32, %c0_i32_0 : i32, i32, i32
  }
  func.func @transform_1(%arg0: i32) -> (i32, i32) {
    %c0_i32 = arith.constant 0 : i32
    %c0_i32_0 = arith.constant 0 : i32
    %c0_i32_1 = arith.constant 0 : i32
    return %c0_i32, %c0_i32_0 : i32, i32
  }
  func.func @transform_2(%arg0: i32) -> (i32, i32) {
    %c0_i32 = arith.constant 0 : i32
    %c0_i32_0 = arith.constant 0 : i32
    %c0_i32_1 = arith.constant 0 : i32
    return %c0_i32, %c0_i32_0 : i32, i32
  }
  func.func @transform_3(%arg0: i32) -> (i32, i32, i32) {
    %c0_i32 = arith.constant 0 : i32
    %c0_i32_0 = arith.constant 0 : i32
    %c0_i32_1 = arith.constant 0 : i32
    %c0_i32_2 = arith.constant 0 : i32
    return %c0_i32, %c0_i32_0, %c0_i32_1 : i32, i32, i32
  }
  func.func @transform_4(%arg0: i32) -> (i32, i32) {
    %c0_i32 = arith.constant 0 : i32
    %c0_i32_0 = arith.constant 0 : i32
    %c0_i32_1 = arith.constant 0 : i32
    return %c0_i32, %c0_i32_0 : i32, i32
  }
  func.func @transform_5(%arg0: i32) -> (i32, i32) {
    %c0_i32 = arith.constant 0 : i32
    %c0_i32_0 = arith.constant 0 : i32
    %c0_i32_1 = arith.constant 0 : i32
    return %c0_i32, %c0_i32_0 : i32, i32
  }
  func.func @transform_6(%arg0: i32) -> (i32, i32) {
    %c0_i32 = arith.constant 0 : i32
    %c0_i32_0 = arith.constant 0 : i32
    %c0_i32_1 = arith.constant 0 : i32
    return %c0_i32, %c0_i32_0 : i32, i32
  }
  func.func @transform_7(%arg0: i32) -> (i32, i32) {
    %c0_i32 = arith.constant 0 : i32
    %c0_i32_0 = arith.constant 0 : i32
    %c0_i32_1 = arith.constant 0 : i32
    return %c0_i32, %c0_i32_0 : i32, i32
  }
  func.func @transform_8(%arg0: i32) -> (i32, i32, i32) {
    %c0_i32 = arith.constant 0 : i32
    %c0_i32_0 = arith.constant 0 : i32
    %c0_i32_1 = arith.constant 0 : i32
    return %arg0, %c0_i32, %c0_i32_0 : i32, i32, i32
  }
}

</mosaic_0001>

<bundles_post_ra>
// kernel: tpu_custom_call.1
= control target key start
LH: loop header
LB: loop body
LE: loop exit
PB: predicated region body
PF: predicated region fallthrough
CT: control target
= control target key end

     0   :  { %13 = vsyncpa [#allocation3], 0  ;;  %s1940_s0 = inlined_call_operand.vmem [shape: f32[2,8,256], index: 0, kind: input, shape index: {}]   ;;  %s1941_s1 = inlined_call_operand.vmem [shape: f32[8,8], index: 1, kind: input, shape index: {}]   ;;  %s1942_s2 = inlined_call_operand.vmem [shape: f32[8,1], index: 2, kind: input, shape index: {}]   ;;  %s1943_s3 = inlined_call_operand.vmem [shape: f32[9,8,8], index: 3, kind: input, shape index: {}]   ;;  %s1944_s4 = inlined_call_operand.vmem [shape: f32[8,1], index: 4, kind: input, shape index: {}]   ;;  %s1945_s5 = inlined_call_operand.vmem [shape: f32[8,8], index: 5, kind: input, shape index: {}]   ;;  %s1946_s6 = inlined_call_operand.vmem [shape: f32[8,1], index: 6, kind: input, shape index: {}]   ;;  %s1947_s7 = inlined_call_operand.vmem [shape: f32[9,256], index: 7, kind: input, shape index: {}]   ;;  %s1948_s8 = inlined_call_operand.hbm [shape: f32[2,8,256], index: 8, kind: output, shape index: {}]  }
   0x1   :  { %15 = vsyncpa [#allocation3 + $0x1], 0  ;;  %s1684_s27 = smov 0   ;;  %s1686_s28 = smov 0  }
   0x2   :  { %s1688_s29 = smov 0   ;;  %s1690_s30 = smov 0  }
   0x3 LB: > { %s1705_s9 = sadd.s32 4294967295, %s1626_s30   ;;  %s1449_s10 = sadd.s32 4294967294, %s1626_s30   ;;  %s1626_s30 = sphi %s1690_s30, %s1954_s30   ;;  %s1622_s29 = sphi %s1688_s29, %s1953_s29   ;;  %s1618_s28 = sphi %s1686_s28, %s1952_s28   ;;  %s1614_s27 = sphi %s1684_s27, %s1951_s27  }
   0x4   : > { %s1709_s11 = sadd.s32 1, %s1626_s30   ;;  %s201_s12 = sadd.s32 1, %s1622_s29 }
   0x5   : > { %s198_s13 = ssub.s32 %s1626_s30, %s1709_s11  ;;  %p211_p0 = scmp.ne.s32.totalorder %s1622_s29, %s1618_s28 }
   0x6   : > { %p199_p1 = scmp.eq.s32.totalorder %s198_s13, 0  ;;  %p212_p2 = scmp.eq.s32.totalorder %s1705_s9, 1 }
   0x7   : > { %p217_p3 = scmp.ne.s32.totalorder %s1618_s28, %s1614_s27  ;;  %p218_p4 = scmp.eq.s32.totalorder %s1449_s10, 1 }
   0x8   : > { %s1720_s14 = scalar_select %p199_p1, %s1622_s29, %s201_s12  }
   0x9   : > { %p1722_p5 = por %p212_p2, %p211_p0  ;;  %p1726_p6 = por %p218_p4, %p217_p3 }
   0xa   : > { %p1452_p7 = scmp.ge.s32.totalorder %s1626_s30, 1  ;;  %p265_p8 = scmp.lt.s32.totalorder %s1626_s30, 3 }
   0xc   : > { %p266_p9 = pnand %p1452_p7, %p265_p8 }
   0xd   : > { %p299_p10 = scmp.lt.s32.totalorder (!%p266_p9), %s1705_s9, 1  ;;  %v305_v0 = vld [vmem:[%s1942_s2] sm:$0xff] (!%p266_p9)  ;;  %v1628_v1 = vmov (!%p266_p9), 0.0   ;;  %v1629_v2 = vmov (!%p266_p9), 0   ;;  %vm348_vm0 = vcmask (!%p266_p9), 64512   ;;  %s1630_s26 = smov (!%p266_p9), 15   ;;  %v437_v23 = vlaneseq (!%p266_p9) }
   0xe   : > { %269 = sbr.rel (%p266_p9) target bundleno = 887 (0x377), region = 52  ;;  %416 = vmatprep.mubr.f32.mxu0 (!%p266_p9), %v1628_v1  ;;  %1554 = vset.pattern.permute.xlu0 (!%p266_p9), %v1629_v2  ;;  %v304_v5 = vld [vmem:[%s1941_s1] sm:$0xff] (!%p266_p9)  ;;  %s1631_s10 = smov (!%p266_p9), 1   ;;  %v1457_v41 = vld [vmem:[%s1943_s3 + $0x10] sm:$0xff] (!%p266_p9)  ;;  %v1458_v59 = vld [vmem:[%s1943_s3 + $0x18] sm:$0xff] (!%p266_p9) }
   0xf   : > { %345 = vperm.xlu0 (!%p266_p9), %1554, %v305_v0   ;;  %786 = vmatprep.mubr.f32.mxu1 (!%p266_p9), %v1628_v1  ;;  %s1632_s12 = smov (!%p266_p9), 127   ;;  %s1633_s13 = smov (!%p266_p9), 17   ;;  %v308_v21 = vld [vmem:[%s1946_s6] sm:$0xff] (!%p266_p9)  ;;  %v444_v24 = vshrl.u32 (!%p266_p9), %v437_v23, 7  ;;  %v1779_v25 = vand.u32 (!%p266_p9), 127, %v437_v23 }
  0x10   : > { %1555 = vset.pattern.permute.xlu1 (!%p266_p9), %v1629_v2  ;;  %s1634_s17 = smov (!%p266_p9), 113   ;;  %s1635_s18 = smov (!%p266_p9), 112   ;;  %v306_v22 = vld [vmem:[%s1944_s4] sm:$0xff] (!%p266_p9) }
  0x11   : > { %v1781_v26 = vsub.s32 (!%p266_p9), 0, %v444_v24  ;;  %v1783_v27 = vsub.s32 (!%p266_p9), 1, %v444_v24  ;;  %v1465_v28 = vld [vmem:[%s1947_s7 + $0x2] ss:$8 sm:$0x3] (!%p266_p9)  ;;  %vm703_vm1 = vcmp.lt.s32.totalorder (!%p266_p9), %v1779_v25, 15 }
  0x12   : > { %v1466_v32 = vld [vmem:[%s1947_s7 + $0x3] ss:$8 sm:$0x3] (!%p266_p9)  ;;  %vm799_vm2 = vcmp.lt.s32.totalorder (!%p266_p9), %v1779_v25, 1  ;;  %vm895_vm3 = vcmp.lt.s32.totalorder (!%p266_p9), %v1779_v25, 127  ;;  %vm439_vm4 = vcmp.lt.s32.totalorder (!%p266_p9), %v1779_v25, 17 }
  0x13   : > { %v714_v29 = vrot.slane (!%p266_p9), %v1465_v28, %v1783_v27  ;;  %v710_v30 = vrot.slane (!%p266_p9), %v1465_v28, %v1781_v26  ;;  %v806_v36 = vrot.slane (!%p266_p9), %v1466_v32, %v1781_v26  ;;  %v810_v37 = vrot.slane (!%p266_p9), %v1466_v32, %v1783_v27  ;;  %v1467_v42 = vld [vmem:[%s1947_s7 + $0x5] ss:$8 sm:$0x3] (!%p266_p9)  ;;  %v326_v50 = vld [vmem:[%s1947_s7] ss:$8 sm:$0x3] (!%p266_p9) }
  0x14   : > { %v906_v48 = vrot.slane (!%p266_p9), %v1467_v42, %v1783_v27  ;;  %v902_v52 = vrot.slane (!%p266_p9), %v1467_v42, %v1781_v26  ;;  %v446_v56 = vrot.slane (!%p266_p9), %v326_v50, %v1781_v26  ;;  %v450_v57 = vrot.slane (!%p266_p9), %v326_v50, %v1783_v27  ;;  %v1468_v60 = vld [vmem:[%s1947_s7 + $0x6] ss:$8 sm:$0x3] (!%p266_p9)  ;;  %s296_s22 = sand.u32 (!%p266_p9), 1, %s1618_s28   ;;  %s1488_s24 = sshll.u32 (!%p266_p9), %s1705_s9, 8 }
  0x15   : > { %s300_s19 = scalar_select %p299_p10, %s1705_s9, 1  ;;  %vm991_vm5 = vcmp.lt.s32.totalorder %v1779_v25, 113  ;;  %vm1087_vm6 = vcmp.lt.s32.totalorder %v1779_v25, 112  ;;  %vm607_vm7 = vcmp.lt.s32.totalorder %v1779_v25, 16  ;;  %vm1183_vm8 = vcmp.lt.s32.totalorder %v1779_v25, 111 }
  0x16   : > { %s1376_s9 = scalar_lea.sflag [#allocation3], %s296_s22 }
  0x17   : > { %s1487_s20 = sshll.u32 %s300_s19, 4  ;;  %s1636_s19 = smov 16  }
  0x18   : > { %s303_s23 = scalar_lea.vmem %s1940_s0, %s1487_s20  ;;  %s1637_s20 = smov 111  }
  0x19   : > { %v1742_v3 = vld [vmem:[%s303_s23 + $0x8] sm:$0xff]  ;;  %v1744_v4 = vld [vmem:[%s303_s23] sm:$0xff]  ;;  %s1453_s23 = sshll.u32 %s296_s22, 4 }
  0x1a   : > { %352 = vmatprep.subr.mxu0 %v1742_v3  ;;  %s298_s25 = scalar_lea.vmem [#allocation2], %s1453_s23 }
  0x1b   : > { %353 = vmatpush1.msra.mxu0 %v1744_v4 }
  0x1c   : > { %1471 = vmatmul.mubr.msk.f32.vlgmr.msra.gmra.mrb[0].mxu0 %vm348_vm0, %v304_v5 }
  0x1d   : > { %522 = vmatprep.mubr.f32.mxu0 %v1628_v1 }
  0x8e   : > { %v346_v6 = vpop.permute.xlu0 %345 }
  0xef   : > { %v418_v7 = vpop.f32.mrb[0].mxu0 }
  0xf0   : > { %v419_v8 = vadd.f32 %v418_v7, %v346_v6  ;;  %v420_v9 = vpop.f32.mrb[1].mxu0 }
  0xf1   : > { %v421_v10 = vadd.f32 %v420_v9, %v346_v6  ;;  %v1002_v6 = vrot.slane %v1468_v60, %v1783_v27  ;;  %v1469_v9 = vld [vmem:[%s1947_s7 + $0x7] ss:$8 sm:$0x3] }
  0xf2   : > { %v425_v11 = vmul.f32 0.70710677, %v419_v8  ;;  %v423_v15 = vmul.f32 0.5, %v419_v8  ;;  %v309_v8 = vld [vmem:[%s1943_s3] sm:$0xff]  ;;  %v1094_v32 = vrot.slane %v1469_v9, %v1781_v26 }
  0xf3   : > { %v426_v12 = vmul.f32 0.70710677, %v421_v10  ;;  %v424_v17 = vmul.f32 0.5, %v421_v10 }
  0xf4   : > { %1556 = verf.f32 %v425_v11  ;;  %v998_v11 = vrot.slane %v1468_v60, %v1781_v26 }
  0xf5   : > { %1558 = verf.f32 %v426_v12 }
  0xfe   : > { %v1557_v13 = vpop.eup %1556 }
  0xff   : > { %v1559_v14 = vpop.eup %1558  ;;  %v429_v16 = vadd.f32 1.0, %v1557_v13 }
 0x100   : > { %v430_v18 = vadd.f32 1.0, %v1559_v14 }
 0x101   : > { %v1753_v19 = vmul.f32 %v429_v16, %v423_v15  ;;  %v1098_v15 = vrot.slane %v1469_v9, %v1783_v27 }
 0x102   : > { %v1755_v20 = vmul.f32 %v430_v18, %v424_v17  ;;  %v1460_v17 = vld [vmem:[%s1943_s3 + $0x28] sm:$0xff] }
 0x103   : > { %699 = vrot.lane.b32.xlu0 %v1753_v19, %s1630_s26  ;;  %v1464_v18 = vld [vmem:[%s1947_s7 + $0x1] ss:$8 sm:$0x3] }
 0x104   : > { %701 = vrot.lane.b32.xlu1 %v1755_v20, %s1630_s26  ;;  %v618_v24 = vrot.slane %v1464_v18, %v1783_v27  ;;  %s1390_s26 = sshll.u32 %s298_s25, 4  ;;  %s1900_s26 = int_to_ptr.vmem [resolvable:$true] %s1390_s26 }
 0x107   : > { %797 = vrot.lane.b32.xlu0 %v1755_v20, %s1631_s10 }
 0x108   : > { %795 = vrot.lane.b32.xlu1 %v1753_v19, %s1631_s10 }
 0x10b   : > { %893 = vrot.lane.b32.xlu0 %v1755_v20, %s1632_s12 }
 0x10c   : > { %891 = vrot.lane.b32.xlu1 %v1753_v19, %s1632_s12 }
 0x10f   : > { %435 = vrot.lane.b32.xlu0 %v1755_v20, %s1633_s13 }
 0x110   : > { %433 = vrot.lane.b32.xlu1 %v1753_v19, %s1633_s13  ;;  %s1898_s13 = scalar_lea.hbm %s1948_s8, %s1488_s24 }
 0x113   : > { %989 = vrot.lane.b32.xlu0 %v1755_v20, %s1634_s17 }
 0x114   : > { %987 = vrot.lane.b32.xlu1 %v1753_v19, %s1634_s17  ;;  %s1564_s17 = scalar_lea.vmem %s1900_s26, 256 }
 0x115   : > { %p1565_p11 = scmp.ne.s32.totalorder %s1900_s26, %s1564_s17 }
 0x117   : > { %1085 = vrot.lane.b32.xlu0 %v1755_v20, %s1635_s18  ;;  %p1566_p12 = pnand %p1565_p11, %p1722_p5 }
 0x118   : > { %1083 = vrot.lane.b32.xlu1 %v1753_v19, %s1635_s18  ;;  %s1638_s18 = smov [#allocation2]  }
 0x119   : > { %p1567_p13 = pneg %p1566_p12 }
 0x11b   : > { %605 = vrot.lane.b32.xlu0 %v1755_v20, %s1636_s19 }
 0x11c   : > { %603 = vrot.lane.b32.xlu1 %v1753_v19, %s1636_s19  ;;  %s1568_s19 = sshll.u32 %s1638_s18, 4  ;;  %s1569_s19 = int_to_ptr.vmem [resolvable:$false] %s1568_s19 }
 0x11d   : > { %p1571_p0 = scmp.lt.s32.totalorder %s1900_s26, %s1569_s19 }
 0x11f   : > { %1181 = vrot.lane.b32.xlu0 %v1755_v20, %s1637_s20 }
 0x120   : > { %1179 = vrot.lane.b32.xlu1 %v1753_v19, %s1637_s20  ;;  %s1570_s20 = scalar_lea.vmem %s1569_s19, 512 }
 0x121   : > { %p1572_p1 = scmp.lt.s32.totalorder %s1570_s20, %s1564_s17 }
 0x123   : > { %1294 = vperm.xlu0 %1554, %v308_v21   ;;  %p1573_p2 = por %p1572_p1, %p1571_p0 }
 0x124   : > { %1277 = vperm.xlu1 %1555, %v306_v22  }
 0x125   : > { %p1574_p3 = pnand %p1573_p2, %p1567_p13 }
 0x175   : > { %v700_v31 = vpop.permute.xlu0 %699 }
 0x176   : > { %v702_v33 = vpop.permute.xlu1 %701 }
 0x177   : > { %v705_v34 = vsel %vm703_vm1, %v702_v33, %v700_v31  ;;  %v704_v35 = vsel %vm703_vm1, %v700_v31, %v702_v33 }
 0x178   : > { %v718_v38 = vmul.f32 %v714_v29, %v704_v35  ;;  %v717_v39 = vmul.f32 %v710_v30, %v705_v34  ;;  %v1459_v29 = vld [vmem:[%s1943_s3 + $0x20] sm:$0xff]  ;;  %v1470_v30 = vld [vmem:[%s1947_s7 + $0x10] ss:$8 sm:$0x3] }
 0x179   : > { %v798_v40 = vpop.permute.xlu0 %797 }
 0x17a   : > { %v796_v43 = vpop.permute.xlu1 %795  ;;  %722 = vmatprep.subr.mxu1 %v718_v38  ;;  %v1194_v38 = vrot.slane %v1470_v30, %v1783_v27  ;;  %v1456_v27 = vld [vmem:[%s1943_s3 + $0x8] sm:$0xff] }
 0x17b   : > { %v800_v44 = vsel %vm799_vm2, %v796_v43, %v798_v40  ;;  %v801_v45 = vsel %vm799_vm2, %v798_v40, %v796_v43  ;;  %723 = vmatpush1.msra.mxu1 %v717_v39  ;;  %v1461_v40 = vld [vmem:[%s1943_s3 + $0x30] sm:$0xff] }
 0x17c   : > { %v813_v46 = vmul.f32 %v806_v36, %v801_v45  ;;  %v814_v47 = vmul.f32 %v810_v37, %v800_v44  ;;  %1475 = vmatmul.mubr.msk.f32.vlgmr.msra.gmra.mrb[0].mxu1 %vm348_vm0, %v1457_v41  ;;  %v1190_v45 = vrot.slane %v1470_v30, %v1781_v26 }
 0x17d   : > { %v894_v49 = vpop.permute.xlu0 %893  ;;  %882 = vmatprep.mubr.f32.mxu1 %v1628_v1 }
 0x17e   : > { %v892_v51 = vpop.permute.xlu1 %891  ;;  %818 = vmatprep.subr.mxu1 %v814_v47  ;;  %v1462_v47 = vld [vmem:[%s1943_s3 + $0x38] sm:$0xff] }
 0x17f   : > { %v897_v53 = vsel %vm895_vm3, %v894_v49, %v892_v51  ;;  %819 = vmatpush1.msra.mxu1 %v813_v46  ;;  %v896_v54 = vsel %vm895_vm3, %v892_v51, %v894_v49 }
 0x180   : > { %v910_v55 = vmul.f32 %v906_v48, %v897_v53  ;;  %v909_v62 = vmul.f32 %v902_v52, %v896_v54 }
 0x181   : > { %v436_v58 = vpop.permute.xlu0 %435 }
 0x182   : > { %v434_v61 = vpop.permute.xlu1 %433  ;;  %914 = vmatprep.subr.mxu1 %v910_v55 }
 0x183   : > { %v440_v63 = vsel %vm439_vm4, %v434_v61, %v436_v58  ;;  %v441_v0 = vsel %vm439_vm4, %v436_v58, %v434_v61 }
 0x184   : > { %v453_v2 = vmul.f32 %v446_v56, %v441_v0  ;;  %v454_v5 = vmul.f32 %v450_v57, %v440_v63  ;;  %1476 = vmatmul.mubr.msk.f32.vlgmr.msra.gmra.mrb[0].mxu1 %vm348_vm0, %v1458_v59 }
 0x185   : > { %915 = vmatpush1.msra.mxu1 %v909_v62  ;;  %v990_v7 = vpop.permute.xlu0 %989  ;;  %978 = vmatprep.mubr.f32.mxu1 %v1628_v1 }
 0x186   : > { %v988_v10 = vpop.permute.xlu1 %987  ;;  %458 = vmatprep.subr.mxu0 %v454_v5  ;;  %v307_v5 = vld [vmem:[%s1945_s5] sm:$0xff] }
 0x187   : > { %v993_v12 = vsel %vm991_vm5, %v990_v7, %v988_v10  ;;  %459 = vmatpush1.msra.mxu0 %v453_v2  ;;  %v992_v13 = vsel %vm991_vm5, %v988_v10, %v990_v7 }
 0x188   : > { %v1006_v14 = vmul.f32 %v1002_v6, %v993_v12  ;;  %1472 = vmatmul.mubr.msk.f32.vlgmr.msra.gmra.mrb[2].mxu0 %vm348_vm0, %v309_v8  ;;  %532 = vmatprep.subr.mxu0 %v1755_v20  ;;  %v1005_v20 = vmul.f32 %v998_v11, %v992_v13 }
 0x189   : > { %533 = vmatpush1.msra.mxu0 %v1753_v19  ;;  %v1086_v16 = vpop.permute.xlu0 %1085  ;;  %596 = vmatprep.mubr.f32.mxu0 %v1628_v1  ;;  %v614_v19 = vrot.slane %v1464_v18, %v1781_v26  ;;  %v1463_v26 = vld [vmem:[%s1943_s3 + $0x40] sm:$0xff] }
 0x18a   : > { %v1084_v21 = vpop.permute.xlu1 %1083  ;;  %1010 = vmatprep.subr.mxu1 %v1006_v14 }
 0x18b   : > { %v1089_v22 = vsel %vm1087_vm6, %v1086_v16, %v1084_v21  ;;  %v1088_v35 = vsel %vm1087_vm6, %v1084_v21, %v1086_v16 }
 0x18c   : > { %v1102_v23 = vmul.f32 %v1098_v15, %v1089_v22  ;;  %1477 = vmatmul.mubr.msk.f32.vlgmr.msra.gmra.mrb[0].mxu1 %vm348_vm0, %v1460_v17  ;;  %v1101_v42 = vmul.f32 %v1094_v32, %v1088_v35 }
 0x18d   : > { %1011 = vmatpush1.msra.mxu1 %v1005_v20  ;;  %v606_v28 = vpop.permute.xlu0 %605  ;;  %1074 = vmatprep.mubr.f32.mxu1 %v1628_v1 }
 0x18e   : > { %v604_v31 = vpop.permute.xlu1 %603  ;;  %1106 = vmatprep.subr.mxu1 %v1102_v23 }
 0x18f   : > { %v608_v33 = vsel %vm607_vm7, %v604_v31, %v606_v28  ;;  %v609_v34 = vsel %vm607_vm7, %v606_v28, %v604_v31 }
 0x190   : > { %v621_v36 = vmul.f32 %v614_v19, %v609_v34  ;;  %v622_v37 = vmul.f32 %v618_v24, %v608_v33  ;;  %1473 = vmatmul.mubr.msk.f32.vlgmr.msra.gmra.mrb[2].mxu0 %vm348_vm0, %v1459_v29 }
 0x191   : > { %v1182_v39 = vpop.permute.xlu0 %1181  ;;  %690 = vmatprep.mubr.f32.mxu0 %v1628_v1 }
 0x192   : > { %v1180_v41 = vpop.permute.xlu1 %1179  ;;  %626 = vmatprep.subr.mxu0 %v622_v37 }
 0x193   : > { %v1185_v43 = vsel %vm1183_vm8, %v1182_v39, %v1180_v41  ;;  %627 = vmatpush1.msra.mxu0 %v621_v36  ;;  %v1184_v46 = vsel %vm1183_vm8, %v1180_v41, %v1182_v39 }
 0x194   : > { %v1198_v44 = vmul.f32 %v1194_v38, %v1185_v43  ;;  %1478 = vmatmul.mubr.msk.f32.vlgmr.msra.gmra.mrb[0].mxu1 %vm348_vm0, %v1461_v40  ;;  %v1197_v48 = vmul.f32 %v1190_v45, %v1184_v46 }
 0x195   : > { %1107 = vmatpush1.msra.mxu1 %v1101_v42  ;;  %1170 = vmatprep.mubr.f32.mxu1 %v1628_v1 }
 0x196   : > { %1202 = vmatprep.subr.mxu1 %v1198_v44 }
 0x198   : > { %1474 = vmatmul.mubr.msk.f32.vlgmr.msra.gmra.mrb[2].mxu0 %vm348_vm0, %v1456_v27 }
 0x199   : > { %1364 = vmatprep.mubr.f32.mxu0 %v1628_v1 }
 0x19c   : > { %1479 = vmatmul.mubr.msk.f32.vlgmr.msra.gmra.mrb[0].mxu1 %vm348_vm0, %v1462_v47 }
 0x19d   : > { %1203 = vmatpush1.msra.mxu1 %v1197_v48  ;;  %1266 = vmatprep.mubr.f32.mxu1 %v1628_v1 }
 0x1a2   : > { %v1295_v6 = vpop.permute.xlu0 %1294 }
 0x1a3   : > { %v1278_v51 = vpop.permute.xlu1 %1277 }
 0x1a4   : > { %1480 = vmatmul.mubr.msk.f32.vlgmr.msra.gmra.mrb[0].mxu1 %vm348_vm0, %v1463_v26 }
 0x26b   : > { %v692_v25 = vpop.f32.mrb[2].mxu0 }
 0x26c   : > { %v694_v49 = vpop.f32.mrb[3].mxu0 }
 0x277   : > { %v1268_v50 = vpop.f32.mrb[0].mxu1 }
 0x278   : > { %v1489_v52 = vadd.f32 %v1268_v50, %v692_v25  ;;  %v1270_v53 = vpop.f32.mrb[1].mxu1 }
 0x279   : > { %v1490_v54 = vadd.f32 %v1270_v53, %v694_v49 }
 0x27a   : > { %v1280_v55 = vadd.f32 %v1489_v52, %v1278_v51 }
 0x27b   : > { %v1281_v56 = vadd.f32 %v1490_v54, %v1278_v51 }
 0x27c   : > { %v1284_v57 = vmul.f32 0.70710677, %v1280_v55  ;;  %v1282_v63 = vmul.f32 0.5, %v1280_v55 }
 0x27d   : > { %v1285_v58 = vmul.f32 0.70710677, %v1281_v56  ;;  %v1283_v61 = vmul.f32 0.5, %v1281_v56 }
 0x27e   : > { %1560 = verf.f32 %v1284_v57 }
 0x27f   : > { %1562 = verf.f32 %v1285_v58 }
 0x288   : > { %v1561_v1 = vpop.eup %1560 }
 0x289   : > { %v1563_v59 = vpop.eup %1562  ;;  %v1288_v60 = vadd.f32 1.0, %v1561_v1 }
 0x28a   : > { %v1289_v62 = vadd.f32 1.0, %v1563_v59 }
 0x28b   : > { %v1290_v2 = vmul.f32 %v1288_v60, %v1282_v63 }
 0x28c   : > { %v1291_v0 = vmul.f32 %v1289_v62, %v1283_v61 }
 0x28e   : > { %1300 = vmatprep.subr.mxu0 %v1291_v0 }
 0x28f   : > { %1301 = vmatpush1.msra.mxu0 %v1290_v2 }
 0x290   : > { %1481 = vmatmul.mubr.msk.f32.vlgmr.msra.gmra.mrb[4].mxu0 %vm348_vm0, %v307_v5 }
 0x363   : > { %v1366_v7 = vpop.f32.mrb[4].mxu0 }
 0x364   : > { %v1367_v8 = vadd.f32 %v1366_v7, %v1295_v6  ;;  %v1368_v9 = vpop.f32.mrb[5].mxu0 }
 0x365   : > { %v1369_v10 = vadd.f32 %v1368_v9, %v1295_v6 }
 0x366   : > { %v1371_v11 = vadd.f32 %v1367_v8, %v1744_v4 }
 0x367   : > { %v1372_v12 = vadd.f32 %v1369_v10, %v1742_v3 }
 0x368   : > { %1373 = vst [vmem:[%s298_s25] sm:$0xff] %v1371_v11 }
 0x369   : > { %1374 = vst [vmem:[%s298_s25 + $0x8] sm:$0xff] %v1372_v12 }
 0x36a   : > { %1577 = shalt.err (!%p1574_p3)
}
 0x36b   : > { %s1578_s21 = scalar_lea.hbm %s1898_s13, 256  ;;  %s1582_s24 = scalar_lea.hbm %s1948_s8, 512 }
 0x36c   : > { %p1579_p4 = scmp.ne.s32.totalorder %s1898_s13, %s1578_s21  ;;  %p1583_p9 = scmp.lt.u32.totalorder %s1898_s13, %s1948_s8 }
 0x36d   : > { %p1584_p10 = scmp.lt.u32.totalorder %s1582_s24, %s1578_s21  ;;  %p1586_p12 = scmp.lt.u32.totalorder %s1578_s21, %s1898_s13 }
 0x36e   : > { %p1580_p7 = pnand %p1579_p4, %p1722_p5 }
 0x36f   : > { %p1585_p11 = por %p1584_p10, %p1583_p9 }
 0x370   : > { %p1581_p8 = pneg %p1580_p7 }
 0x371   : > { %p1587_p13 = por %p1586_p12, %p1585_p11 }
 0x373   : > { %p1588_p0 = pnand %p1587_p13, %p1581_p8 }
 0x375   : > { %1591 = shalt.err (!%p1588_p0)
}
 0x376   : > { %1505 = dma.vmem_to_hbm [thread:$0]  (%p1722_p5), %s1900_s26, 256, %s1898_s13, %s1376_s9  }
 0x377 PF: > { %p1511_p1 = scmp.ge.s32.totalorder %s1626_s30, 2  ;;  %s1402_s12 = sand.u32 1, %s1614_s27  }
 0x378   : > { %s1403_s17 = scalar_lea.sflag [#allocation3], %s1402_s12 }
 0x379   : > { %p1508_p2 = pnand %p1511_p1, %p1726_p6 }
 0x37b   : > { %1609 = dma.done.wait (!%p1508_p2), %s1403_s17, 256  }
 0x37c   : > { %1611 = vsyncadd (!%p1508_p2), %s1403_s17, 4294967040  ;;  %p18_p3 = scmp.ge.s32.totalorder %s1709_s11, 4   ;;  %s1951_s27 = smov %s1618_s28 }
 0x37d   : > { %s1952_s28 = smov %s1622_s29  ;;  %s1953_s29 = smov %s1720_s14 }
 0x37e   : > { %s1954_s30 = smov %s1709_s11  ;;  %20 = sbr.rel (!%p18_p3) target bundleno = 3 (0x3), region = 102 }
 0x385   :  { %1408 = vsyncpa [#allocation3], 1 }
 0x386   :  { %1410 = vsyncpa [#allocation3 + $0x1], 1 }

</bundles_post_ra>
